<compile_context>
chip_gen: v7x
topology: tpu7x:2x2x1
jax: 0.10.0
libtpu: 0.0.40
codegen_flags: <defaults>
</compile_context>

<pallas_src>
import jax
import jax.numpy as jnp
from jax.experimental import pallas as pl
from jax.experimental.pallas import tpu as pltpu


def _round_up(x, m):
    return ((x + m - 1) // m) * m


# --------------------------------------------------------------------------
# Kernels
# --------------------------------------------------------------------------

def _linear_relu_fused_kernel(x_ref, w_ref, b_ref, o_ref):
    # Collapsed-K path: full reduction dim resident in VMEM, no accumulator.
    # x_ref: (tm, K) bf16   w_ref: (K, tn) bf16   b_ref: (1, tn) f32
    y = jnp.dot(x_ref[...], w_ref[...], preferred_element_type=jnp.float32)
    y = y + b_ref[...]                     # broadcast bias over rows
    # dropout (p=0.5) in eval mode == identity
    o_ref[...] = jnp.maximum(y, 0.0).astype(o_ref.dtype)


def _linear_relu_acc_kernel(x_ref, w_ref, b_ref, o_ref, acc_ref):
    # Large-K fallback: tiled reduction with an f32 VMEM accumulator.
    k = pl.program_id(2)

    @pl.when(k == 0)
    def _():
        acc_ref[...] = jnp.zeros_like(acc_ref)

    acc_ref[...] += jnp.dot(x_ref[...], w_ref[...],
                            preferred_element_type=jnp.float32)

    @pl.when(k == pl.num_programs(2) - 1)
    def _():
        y = acc_ref[...] + b_ref[...]
        o_ref[...] = jnp.maximum(y, 0.0).astype(o_ref.dtype)


# --------------------------------------------------------------------------
# One-time parameter preparation (hoisted out of the per-call hot path)
# --------------------------------------------------------------------------

def prepare_dann_params(w, b, *, compute_dtype=jnp.bfloat16,
                        tn=None, tk=512, collapse_k_limit=8192):
    """Cast + pad Linear weight/bias once (weights are static in eval mode).

    w: (K, N)  -- PyTorch Linear weight already transposed to (in, out)
    b: (N,)
    """
    K, N = w.shape

    # N tiling: match the 256-wide MXU output dim on v6e/v7x (fine on v5e too).
    if tn is None:
        tn = min(256, _round_up(N, 128))
    N_pad = _round_up(N, tn)

    # Collapse K when a full K-slice of W at width tn is trivially VMEM
    # resident (e.g. 768 x 256 bf16 = 384 KB); otherwise tile the reduction.
    collapse_k = K <= collapse_k_limit
    if collapse_k:
        K_pad = _round_up(K, 128)
        tk_eff = K_pad
    else:
        K_pad = _round_up(K, tk)
        tk_eff = tk

    wp = jnp.pad(w.astype(compute_dtype), ((0, K_pad - K), (0, N_pad - N)))
    bp = jnp.pad(b.astype(jnp.float32), (0, N_pad - N)).reshape(1, N_pad)

    return {
        "w": wp, "b": bp,
        "K": K, "N": N, "K_pad": K_pad, "N_pad": N_pad,
        "tn": tn, "tk": tk_eff, "collapse_k": collapse_k,
        "compute_dtype": compute_dtype,
    }


# --------------------------------------------------------------------------
# Forward pass
# --------------------------------------------------------------------------

def dann_backbone_forward(x, params, *, out_dtype=jnp.float32):
    """x: (B, ...) float array, flattened to (B, K) like x.view(B, -1)."""
    B = x.shape[0]
    x_flat = x.reshape(B, -1)
    K, N = params["K"], params["N"]
    assert x_flat.shape[1] == K, "flattened input dim must match weight rows"
    K_pad, N_pad = params["K_pad"], params["N_pad"]
    tn, tk = params["tn"], params["tk"]
    cdt = params["compute_dtype"]
    wp, bp = params["w"], params["b"]

    # bf16 packs two rows per sublane: pad the batch / tm to a multiple of 16.
    tm = min(128, _round_up(B, 16))
    M_pad = _round_up(B, tm)

    xp = jnp.pad(x_flat.astype(cdt), ((0, M_pad - B), (0, K_pad - K)))

    m_blocks = M_pad // tm
    n_blocks = N_pad // tn

    in_itemsize = jnp.dtype(cdt).itemsize
    cost = pl.CostEstimate(
        flops=2 * M_pad * K_pad * N_pad,
        transcendentals=0,
        bytes_accessed=(M_pad * K_pad * in_itemsize        # x read
                        + K_pad * N_pad * in_itemsize      # w read (once)
                        + N_pad * 4                        # bias read
                        + M_pad * N_pad * jnp.dtype(out_dtype).itemsize))

    if params["collapse_k"]:
        # Grid (j, i) with the M axis innermost: W's block index is unchanged
        # between consecutive steps, so its DMA is skipped and the weight stays
        # VMEM-resident across all M tiles of a given N block.  For the demo
        # shape this is a single (1, 1) grid step with everything resident.
        out_padded = pl.pallas_call(
            _linear_relu_fused_kernel,
            out_shape=jax.ShapeDtypeStruct((M_pad, N_pad), out_dtype),
            grid_spec=pltpu.PrefetchScalarGridSpec(
                num_scalar_prefetch=0,
                grid=(n_blocks, m_blocks),
                in_specs=[
                    pl.BlockSpec((tm, K_pad), lambda j, i: (i, 0)),
                    pl.BlockSpec((K_pad, tn), lambda j, i: (0, j)),
                    pl.BlockSpec((1, tn), lambda j, i: (0, j)),
                ],
                out_specs=pl.BlockSpec((tm, tn), lambda j, i: (i, j)),
            ),
            compiler_params=pltpu.CompilerParams(
                dimension_semantics=("parallel", "parallel"),
                vmem_limit_bytes=32 * 1024 * 1024),
            cost_estimate=cost,
        )(xp, wp, bp)
    else:
        # Large-K fallback: 3-D grid, reduction axis last, f32 VMEM accumulator.
        out_padded = pl.pallas_call(
            _linear_relu_acc_kernel,
            out_shape=jax.ShapeDtypeStruct((M_pad, N_pad), out_dtype),
            grid_spec=pltpu.PrefetchScalarGridSpec(
                num_scalar_prefetch=0,
                grid=(m_blocks, n_blocks, K_pad // tk),
                in_specs=[
                    pl.BlockSpec((tm, tk), lambda i, j, k: (i, k)),
                    pl.BlockSpec((tk, tn), lambda i, j, k: (k, j)),
                    pl.BlockSpec((1, tn), lambda i, j, k: (0, j)),
                ],
                out_specs=pl.BlockSpec((tm, tn), lambda i, j, k: (i, j)),
                scratch_shapes=[pltpu.VMEM((tm, tn), jnp.float32)],
            ),
            compiler_params=pltpu.CompilerParams(
                dimension_semantics=("parallel", "parallel", "arbitrary"),
                vmem_limit_bytes=32 * 1024 * 1024),
            cost_estimate=cost,
        )(xp, wp, bp)

    # Drop padded rows/cols (padded rows would otherwise hold relu(bias)).
    return out_padded[:B, :N]


# --------------------------------------------------------------------------
# Demo / self-test
# --------------------------------------------------------------------------

if __name__ == "__main__":
    # Small shapes consistent with the module: image (B, 3, 16, 16) ->
    # n_input = 768, n_hidden = 256.
    B, C, H, W = 2, 3, 16, 16
    n_input = C * H * W          # 768
    n_hidden = 256

    key = jax.random.PRNGKey(0)
    kx, kw, kb = jax.random.split(key, 3)

    x = jax.random.normal(kx, (B, C, H, W), dtype=jnp.float32)

    # Deterministic init mimicking nn.Linear: U(-1/sqrt(fan_in), 1/sqrt(fan_in)).
    bound = 1.0 / jnp.sqrt(jnp.float32(n_input))
    # Stored already transposed: (K, N) so the kernel does x @ W (== x @ W_pt.T).
    w = jax.random.uniform(kw, (n_input, n_hidden), dtype=jnp.float32,
                           minval=-bound, maxval=bound)
    b = jax.random.uniform(kb, (n_hidden,), dtype=jnp.float32,
                           minval=-bound, maxval=bound)

    # One-time weight prep (cast/pad hoisted out of the per-call hot path).
    params = prepare_dann_params(w, b)

    out = dann_backbone_forward(x, params)
    out = jax.block_until_ready(out)
    assert out.shape == (B, n_hidden)

    # Reference with the same bf16 compute dtype / f32 accumulation (tight
    # check of the kernel math itself).
    xb = x.reshape(B, -1).astype(jnp.bfloat16)
    wb = w.astype(jnp.bfloat16)
    ref_bf16 = jnp.maximum(
        jnp.dot(xb, wb, preferred_element_type=jnp.float32) + b, 0.0)
    assert jnp.allclose(out, ref_bf16, atol=1e-3, rtol=1e-3)

    # Loose sanity check against the pure-f32 PyTorch-equivalent reference
    # (bf16 inputs introduce ~0.4% relative error).
    ref_f32 = jnp.maximum(x.reshape(B, -1) @ w + b, 0.0)
    assert jnp.allclose(out, ref_f32, atol=5e-2, rtol=5e-2)

    print("KERNEL_OK")
</pallas_src>

<mosaic_0001>
module attributes {stable_mosaic.version = 11 : i64} {
  func.func @_linear_relu_fused_kernel(%arg0: i32, %arg1: i32, %arg2: memref<16x768xbf16, #tpu.memory_space<vmem>>, %arg3: memref<768x256xbf16, #tpu.memory_space<vmem>>, %arg4: memref<1x256xf32, #tpu.memory_space<vmem>>, %arg5: memref<16x256xf32, #tpu.memory_space<vmem>>) attributes {dimension_semantics = [#tpu.dimension_semantics<parallel>, #tpu.dimension_semantics<parallel>], iteration_bounds = array<i64: 1, 1>, scalar_prefetch = 0 : i64, scratch_operands = 0 : i64, tpu.core_type = #tpu.core_type<tc>, window_params = [{transform_indices = @transform_0, window_bounds = array<i64: 16, 768>}, {transform_indices = @transform_1, window_bounds = array<i64: 768, 256>}, {transform_indices = @transform_2, window_bounds = array<i64: 1, 256>}, {transform_indices = @transform_3, window_bounds = array<i64: 16, 256>}]} {
    %c0 = arith.constant 0 : index
    %c0_0 = arith.constant 0 : index
    %0 = vector.load %arg2[%c0, %c0_0] : memref<16x768xbf16, #tpu.memory_space<vmem>>, vector<16x768xbf16>
    %c0_1 = arith.constant 0 : index
    %c0_2 = arith.constant 0 : index
    %1 = vector.load %arg3[%c0_1, %c0_2] : memref<768x256xbf16, #tpu.memory_space<vmem>>, vector<768x256xbf16>
    %cst = arith.constant dense<0.000000e+00> : vector<16x256xf32>
    %2 = tpu.matmul %0, %1, %cst {dimension_numbers = #tpu.dot_dimension_numbers<[1], [0], [0], [1], [0, 0, 1, 1], [], []>} : vector<16x768xbf16>, vector<768x256xbf16>, vector<16x256xf32> -> vector<16x256xf32>
    %c0_3 = arith.constant 0 : index
    %c0_4 = arith.constant 0 : index
    %3 = vector.load %arg4[%c0_3, %c0_4] : memref<1x256xf32, #tpu.memory_space<vmem>>, vector<1x256xf32>
    %4 = vector.broadcast %3 : vector<1x256xf32> to vector<16x256xf32>
    %5 = arith.addf %2, %4 : vector<16x256xf32>
    %cst_5 = arith.constant 0.000000e+00 : f32
    %6 = vector.broadcast %cst_5 : f32 to vector<16x256xf32>
    %7 = arith.maximumf %5, %6 : vector<16x256xf32>
    %c0_6 = arith.constant 0 : index
    %c0_7 = arith.constant 0 : index
    %8 = vector.load %arg5[%c0_6, %c0_7] : memref<16x256xf32, #tpu.memory_space<vmem>>, vector<16x256xf32>
    tpu.vector_store %arg5[%c0_6, %c0_7], %7 {strides = array<i32>} : memref<16x256xf32, #tpu.memory_space<vmem>>, vector<16x256xf32>,
    return
  }
  func.func @transform_0(%arg0: i32, %arg1: i32) -> (i32, i32) {
    %c0_i32 = arith.constant 0 : i32
    %c0_i32_0 = arith.constant 0 : i32
    return %arg1, %c0_i32 : i32, i32
  }
  func.func @transform_1(%arg0: i32, %arg1: i32) -> (i32, i32) {
    %c0_i32 = arith.constant 0 : i32
    %c0_i32_0 = arith.constant 0 : i32
    return %c0_i32, %arg0 : i32, i32
  }
  func.func @transform_2(%arg0: i32, %arg1: i32) -> (i32, i32) {
    %c0_i32 = arith.constant 0 : i32
    %c0_i32_0 = arith.constant 0 : i32
    return %c0_i32, %arg0 : i32, i32
  }
  func.func @transform_3(%arg0: i32, %arg1: i32) -> (i32, i32) {
    %c0_i32 = arith.constant 0 : i32
    return %arg1, %arg0 : i32, i32
  }
}

</mosaic_0001>

<bundles_post_ra>
// kernel: tpu_custom_call.1
= control target key start
LH: loop header
LB: loop body
LE: loop exit
PB: predicated region body
PF: predicated region fallthrough
CT: control target
= control target key end

     0   :  { %8 = vsyncpa [#allocation3], 0  ;;  %s1238_s0 = inlined_call_operand.hbm [shape: bf16[16,768], index: 0, kind: input, shape index: {}]   ;;  %s1239_s1 = inlined_call_operand.hbm [shape: bf16[768,256], index: 1, kind: input, shape index: {}]   ;;  %s1240_s2 = inlined_call_operand.vmem [shape: f32[1,256], index: 2, kind: input, shape index: {}]   ;;  %s1241_s3 = inlined_call_operand.hbm [shape: f32[16,256], index: 3, kind: output, shape index: {}]  }
   0x1   :  { %9 = vsyncpa [#allocation6], 0 }
   0x2   :  { %10 = vsyncpa [#allocation4], 0  ;;  %s1170_s12 = smov [#allocation2]   ;;  %s1098_s16 = scalar_lea.hbm %s1238_s0, 768 }
   0x3   :  { %s16_s13 = sshll.u32 %s1170_s12, 4  ;;  %p1099_p0 = scmp.ne.s32.totalorder %s1238_s0, %s1098_s16  ;;  %s17_s13 = int_to_ptr.vmem [resolvable:$true] %s16_s13 }
   0x4   :  { %p1102_p1 = scmp.lt.u32.totalorder %s1098_s16, %s1238_s0 }
   0x6   :  { %p1104_p2 = pnand %p1102_p1, %p1099_p0 }
   0x8   :  { %1107 = shalt.err (!%p1104_p2)
}
   0x9   :  { %s1108_s21 = scalar_lea.vmem %s17_s13, 768  ;;  %p1113_p4 = scmp.lt.s32.totalorder %s17_s13, %s17_s13 }
   0xa   :  { %p1109_p3 = scmp.ne.s32.totalorder %s17_s13, %s1108_s21  ;;  %p1114_p5 = scmp.lt.s32.totalorder %s1108_s21, %s1108_s21 }
   0xc   :  { %p1115_p6 = por %p1114_p5, %p1113_p4 }
   0xe   :  { %p1116_p7 = pnand %p1115_p6, %p1109_p3 }
  0x10   :  { %1119 = shalt.err (!%p1116_p7)
}
  0x11   :  { %s1171_s22 = smov 384   ;;  %s1172_s23 = smov 24  }
  0x12   :  { %22 = dma.hbm_to_vmem [thread:$0]  %s1238_s0, 768, %s17_s13, [#allocation3], %s1171_s22, %s1171_s22, %s1172_s23  }
  0x13   :  { %s1173_s26 = smov [#allocation5]   ;;  %s1120_s30 = scalar_lea.hbm %s1239_s1, 12288 }
  0x14   :  { %s28_s27 = sshll.u32 %s1173_s26, 4  ;;  %p1121_p8 = scmp.ne.s32.totalorder %s1239_s1, %s1120_s30  ;;  %s29_s27 = int_to_ptr.vmem [resolvable:$true] %s28_s27 }
  0x15   :  { %p1124_p9 = scmp.lt.u32.totalorder %s1120_s30, %s1239_s1 }
  0x17   :  { %p1126_p10 = pnand %p1124_p9, %p1121_p8 }
  0x19   :  { %1129 = shalt.err (!%p1126_p10)
}
  0x1a   :  { %s1130_s8 = scalar_lea.vmem %s29_s27, 12288  ;;  %p1135_p12 = scmp.lt.s32.totalorder %s29_s27, %s29_s27 }
  0x1b   :  { %p1131_p11 = scmp.ne.s32.totalorder %s29_s27, %s1130_s8  ;;  %p1136_p13 = scmp.lt.s32.totalorder %s1130_s8, %s1130_s8 }
  0x1d   :  { %p1137_p0 = por %p1136_p13, %p1135_p12 }
  0x1f   :  { %p1138_p1 = pnand %p1137_p0, %p1131_p11 }
  0x21   :  { %1141 = shalt.err (!%p1138_p1)
}
  0x22   :  { %s1174_s0 = smov 128   ;;  %s1175_s9 = smov 8  }
  0x23   :  { %34 = dma.hbm_to_vmem [thread:$0]  %s1239_s1, 12288, %s29_s27, [#allocation6], %s1174_s0, %s1174_s0, %s1175_s9  }
  0x24   :  { %1164 = dma.done.wait [#allocation3], 768  }
  0x25   :  { %1165 = vsyncadd [#allocation3], 4294966528 }
  0x26   :  { %1166 = dma.done.wait [#allocation6], 12288  }
  0x27   :  { %1167 = vsyncadd [#allocation6], 4294955008  ;;  %v945_v0 = vld [vmem:[#allocation5 + $0x104] ss:$8 sps:$4 sm:$0xff]   ;;  %v947_v1 = vld [vmem:[#allocation5 + $0x100] ss:$8 sps:$4 sm:$0xff]  }
  0x28   :  { %710 = vmatprep.subr.bf16.mxu0 %v945_v0  ;;  %v948_v2 = vld [vmem:[#allocation5 + $0x114] ss:$8 sps:$4 sm:$0xff]   ;;  %v950_v3 = vld [vmem:[#allocation5 + $0x110] ss:$8 sps:$4 sm:$0xff]   ;;  %v951_v4 = vld [vmem:[#allocation5 + $0x124] ss:$8 sps:$4 sm:$0xff]  }
  0x29   :  { %711 = vmatpush1.bf16.msra.mxu0 %v947_v1  ;;  %v953_v5 = vld [vmem:[#allocation5 + $0x120] ss:$8 sps:$4 sm:$0xff]   ;;  %v954_v6 = vld [vmem:[#allocation5 + $0x134] ss:$8 sps:$4 sm:$0xff]   ;;  %v956_v7 = vld [vmem:[#allocation5 + $0x130] ss:$8 sps:$4 sm:$0xff]  }
  0x2a   :  { %712 = vmatprep.subr.bf16.mxu0 %v948_v2  ;;  %v957_v8 = vld [vmem:[#allocation5 + $0x144] ss:$8 sps:$4 sm:$0xff]   ;;  %v959_v9 = vld [vmem:[#allocation5 + $0x140] ss:$8 sps:$4 sm:$0xff]   ;;  %v960_v10 = vld [vmem:[#allocation5 + $0x154] ss:$8 sps:$4 sm:$0xff]  }
  0x2b   :  { %v962_v11 = vld [vmem:[#allocation5 + $0x150] ss:$8 sps:$4 sm:$0xff]   ;;  %v963_v12 = vld [vmem:[#allocation5 + $0x164] ss:$8 sps:$4 sm:$0xff]   ;;  %v992_v14 = vld [vmem:[#allocation5] ss:$8 sps:$4 sm:$0xff]  }
  0x2c   :  { %v990_v13 = vld [vmem:[#allocation5 + $0x4] ss:$8 sps:$4 sm:$0xff]   ;;  %v965_v15 = vld [vmem:[#allocation5 + $0x160] ss:$8 sps:$4 sm:$0xff]   ;;  %v996_v16 = vld [vmem:[#allocation5 + $0x14] ss:$8 sps:$4 sm:$0xff]  }
  0x2d   :  { %713 = vmatpush1.bf16.msra.mxu0 %v950_v3  ;;  %667 = vmatprep.subr.bf16.mxu1 %v990_v13  ;;  %v998_v17 = vld [vmem:[#allocation5 + $0x10] ss:$8 sps:$4 sm:$0xff]   ;;  %v966_v18 = vld [vmem:[#allocation5 + $0x174] ss:$8 sps:$4 sm:$0xff]   ;;  %v1005_v21 = vld [vmem:[#allocation5 + $0x24] ss:$8 sps:$4 sm:$0xff]  }
  0x2e   :  { %714 = vmatprep.subr.bf16.mxu0 %v951_v4  ;;  %668 = vmatpush1.bf16.msra.mxu1 %v992_v14  ;;  %v1001_v19 = vld [vmem:[#allocation2 + $0xc] ss:$24 sps:$4 sm:$0xff]   ;;  %v968_v20 = vld [vmem:[#allocation5 + $0x170] ss:$8 sps:$4 sm:$0xff]   ;;  %v1007_v22 = vld [vmem:[#allocation5 + $0x20] ss:$8 sps:$4 sm:$0xff]  }
  0x2f   :  { %669 = vmatprep.subr.bf16.mxu1 %v996_v16  ;;  %v969_v23 = vld [vmem:[#allocation5 + $0x184] ss:$8 sps:$4 sm:$0xff]   ;;  %742 = vmatprep.mubr.bf16.mxu0 %v1001_v19  ;;  %v971_v24 = vld [vmem:[#allocation5 + $0x180] ss:$8 sps:$4 sm:$0xff]   ;;  %v1011_v25 = vld [vmem:[#allocation5 + $0x34] ss:$8 sps:$4 sm:$0xff]  }
  0x30   :  { %v972_v26 = vld [vmem:[#allocation5 + $0x194] ss:$8 sps:$4 sm:$0xff]   ;;  %v1013_v27 = vld [vmem:[#allocation5 + $0x30] ss:$8 sps:$4 sm:$0xff]   ;;  %v1017_v28 = vld [vmem:[#allocation5 + $0x44] ss:$8 sps:$4 sm:$0xff]  }
  0x31   :  { %715 = vmatpush1.bf16.msra.mxu0 %v953_v5  ;;  %v974_v29 = vld [vmem:[#allocation5 + $0x190] ss:$8 sps:$4 sm:$0xff]   ;;  %v975_v30 = vld [vmem:[#allocation5 + $0x1a4] ss:$8 sps:$4 sm:$0xff]   ;;  %v1019_v31 = vld [vmem:[#allocation5 + $0x40] ss:$8 sps:$4 sm:$0xff]  }
  0x32   :  { %716 = vmatprep.subr.bf16.mxu0 %v954_v6  ;;  %670 = vmatpush1.bf16.msra.mxu1 %v998_v17  ;;  %v1023_v32 = vld [vmem:[#allocation5 + $0x54] ss:$8 sps:$4 sm:$0xff]   ;;  %v977_v33 = vld [vmem:[#allocation5 + $0x1a0] ss:$8 sps:$4 sm:$0xff]   ;;  %v1025_v35 = vld [vmem:[#allocation5 + $0x50] ss:$8 sps:$4 sm:$0xff]  }
  0x33   :  { %671 = vmatprep.subr.bf16.mxu1 %v1005_v21  ;;  %v978_v34 = vld [vmem:[#allocation5 + $0x1b4] ss:$8 sps:$4 sm:$0xff]   ;;  %v1029_v36 = vld [vmem:[#allocation5 + $0x64] ss:$8 sps:$4 sm:$0xff]   ;;  %v980_v37 = vld [vmem:[#allocation5 + $0x1b0] ss:$8 sps:$4 sm:$0xff]  }
  0x34   :  { %v981_v38 = vld [vmem:[#allocation5 + $0x1c4] ss:$8 sps:$4 sm:$0xff]   ;;  %v1031_v39 = vld [vmem:[#allocation5 + $0x60] ss:$8 sps:$4 sm:$0xff]   ;;  %v1035_v40 = vld [vmem:[#allocation5 + $0x74] ss:$8 sps:$4 sm:$0xff]  }
  0x35   :  { %717 = vmatpush1.bf16.msra.mxu0 %v956_v7  ;;  %v983_v41 = vld [vmem:[#allocation5 + $0x1c0] ss:$8 sps:$4 sm:$0xff]   ;;  %v984_v42 = vld [vmem:[#allocation5 + $0x1d4] ss:$8 sps:$4 sm:$0xff]   ;;  %v1037_v43 = vld [vmem:[#allocation5 + $0x70] ss:$8 sps:$4 sm:$0xff]  }
  0x36   :  { %718 = vmatprep.subr.bf16.mxu0 %v957_v8  ;;  %672 = vmatpush1.bf16.msra.mxu1 %v1007_v22  ;;  %v1041_v44 = vld [vmem:[#allocation5 + $0x84] ss:$8 sps:$4 sm:$0xff]   ;;  %v986_v45 = vld [vmem:[#allocation5 + $0x1d0] ss:$8 sps:$4 sm:$0xff]   ;;  %v1043_v47 = vld [vmem:[#allocation5 + $0x80] ss:$8 sps:$4 sm:$0xff]  }
  0x37   :  { %673 = vmatprep.subr.bf16.mxu1 %v1011_v25  ;;  %v987_v46 = vld [vmem:[#allocation5 + $0x1e4] ss:$8 sps:$4 sm:$0xff]   ;;  %v1047_v48 = vld [vmem:[#allocation5 + $0x94] ss:$8 sps:$4 sm:$0xff]   ;;  %v989_v49 = vld [vmem:[#allocation5 + $0x1e0] ss:$8 sps:$4 sm:$0xff]  }
  0x38   :  { %v993_v50 = vld [vmem:[#allocation5 + $0x1f4] ss:$8 sps:$4 sm:$0xff]   ;;  %v1049_v51 = vld [vmem:[#allocation5 + $0x90] ss:$8 sps:$4 sm:$0xff]   ;;  %v1053_v52 = vld [vmem:[#allocation5 + $0xa4] ss:$8 sps:$4 sm:$0xff]  }
  0x39   :  { %719 = vmatpush1.bf16.msra.mxu0 %v959_v9  ;;  %v995_v53 = vld [vmem:[#allocation5 + $0x1f0] ss:$8 sps:$4 sm:$0xff]   ;;  %v1004_v54 = vld [vmem:[#allocation5 + $0x204] ss:$8 sps:$4 sm:$0xff]   ;;  %v1055_v55 = vld [vmem:[#allocation5 + $0xa0] ss:$8 sps:$4 sm:$0xff]  }
  0x3a   :  { %720 = vmatprep.subr.bf16.mxu0 %v960_v10  ;;  %674 = vmatpush1.bf16.msra.mxu1 %v1013_v27  ;;  %v1059_v56 = vld [vmem:[#allocation5 + $0xb4] ss:$8 sps:$4 sm:$0xff]   ;;  %v999_v57 = vld [vmem:[#allocation2 + $0x8] ss:$24 sps:$4 sm:$0xff]   ;;  %v1002_v58 = vld [vmem:[#allocation5 + $0x200] ss:$8 sps:$4 sm:$0xff]  }
  0x3b   :  { %675 = vmatprep.subr.bf16.mxu1 %v1017_v28  ;;  %v1010_v59 = vld [vmem:[#allocation5 + $0x214] ss:$8 sps:$4 sm:$0xff]   ;;  %v1061_v60 = vld [vmem:[#allocation5 + $0xb0] ss:$8 sps:$4 sm:$0xff]   ;;  %v1065_v61 = vld [vmem:[#allocation5 + $0xc4] ss:$8 sps:$4 sm:$0xff]  }
  0x3c   :  { %v1091_v62 = vld [vmem:[#allocation2 + $0x4] ss:$24 sps:$4 sm:$0xff]   ;;  %v1008_v63 = vld [vmem:[#allocation5 + $0x210] ss:$8 sps:$4 sm:$0xff]   ;;  %v1067_v0 = vld [vmem:[#allocation5 + $0xc0] ss:$8 sps:$4 sm:$0xff]  }
  0x3d   :  { %721 = vmatpush1.bf16.msra.mxu0 %v962_v11  ;;  %v1097_v1 = vld [vmem:[#allocation2 + $0x14] ss:$24 sps:$4 sm:$0xff]   ;;  %699 = vmatprep.mubr.bf16.mxu1 %v1091_v62  ;;  %v1014_v4 = vld [vmem:[#allocation5 + $0x220] ss:$8 sps:$4 sm:$0xff]   ;;  %v1073_v5 = vld [vmem:[#allocation5 + $0xd0] ss:$8 sps:$4 sm:$0xff]  }
  0x3e   :  { %722 = vmatprep.subr.bf16.mxu0 %v963_v12  ;;  %676 = vmatpush1.bf16.msra.mxu1 %v1019_v31  ;;  %v1016_v2 = vld [vmem:[#allocation5 + $0x224] ss:$8 sps:$4 sm:$0xff]   ;;  %v1071_v3 = vld [vmem:[#allocation5 + $0xd4] ss:$8 sps:$4 sm:$0xff]   ;;  %v1020_v8 = vld [vmem:[#allocation5 + $0x230] ss:$8 sps:$4 sm:$0xff]  }
  0x3f   :  { %677 = vmatprep.subr.bf16.mxu1 %v1023_v32  ;;  %v1022_v6 = vld [vmem:[#allocation5 + $0x234] ss:$8 sps:$4 sm:$0xff]   ;;  %v1077_v7 = vld [vmem:[#allocation5 + $0xe4] ss:$8 sps:$4 sm:$0xff]   ;;  %v1079_v9 = vld [vmem:[#allocation5 + $0xe0] ss:$8 sps:$4 sm:$0xff]  }
  0x40   :  { %v1028_v10 = vld [vmem:[#allocation5 + $0x244] ss:$8 sps:$4 sm:$0xff]   ;;  %v1083_v11 = vld [vmem:[#allocation5 + $0xf4] ss:$8 sps:$4 sm:$0xff]   ;;  %v1026_v12 = vld [vmem:[#allocation5 + $0x240] ss:$8 sps:$4 sm:$0xff]  }
  0x41   :  { %723 = vmatpush1.bf16.msra.mxu0 %v965_v15  ;;  %v1085_v13 = vld [vmem:[#allocation5 + $0xf0] ss:$8 sps:$4 sm:$0xff]   ;;  %v1034_v14 = vld [vmem:[#allocation5 + $0x254] ss:$8 sps:$4 sm:$0xff]   ;;  %v1040_v17 = vld [vmem:[#allocation5 + $0x264] ss:$8 sps:$4 sm:$0xff]  }
  0x42   :  { %724 = vmatprep.subr.bf16.mxu0 %v966_v18  ;;  %678 = vmatpush1.bf16.msra.mxu1 %v1025_v35  ;;  %v1089_v15 = vld [vmem:[#allocation2] ss:$24 sps:$4 sm:$0xff]   ;;  %v1046_v19 = vld [vmem:[#allocation5 + $0x274] ss:$8 sps:$4 sm:$0xff]   ;;  %v1052_v21 = vld [vmem:[#allocation5 + $0x284] ss:$8 sps:$4 sm:$0xff]  }
  0x43   :  { %679 = vmatprep.subr.bf16.mxu1 %v1029_v36  ;;  %v1032_v16 = vld [vmem:[#allocation5 + $0x250] ss:$8 sps:$4 sm:$0xff]   ;;  %v1038_v18 = vld [vmem:[#allocation5 + $0x260] ss:$8 sps:$4 sm:$0xff]   ;;  %v1064_v25 = vld [vmem:[#allocation5 + $0x2a4] ss:$8 sps:$4 sm:$0xff]  }
  0x44   :  { %v1050_v22 = vld [vmem:[#allocation5 + $0x280] ss:$8 sps:$4 sm:$0xff]   ;;  %v1070_v27 = vld [vmem:[#allocation5 + $0x2b4] ss:$8 sps:$4 sm:$0xff]   ;;  %v1068_v28 = vld [vmem:[#allocation5 + $0x2b0] ss:$8 sps:$4 sm:$0xff]  }
  0x45   :  { %725 = vmatpush1.bf16.msra.mxu0 %v968_v20  ;;  %v1044_v20 = vld [vmem:[#allocation5 + $0x270] ss:$8 sps:$4 sm:$0xff]   ;;  %v1082_v31 = vld [vmem:[#allocation5 + $0x2d4] ss:$8 sps:$4 sm:$0xff]   ;;  %s1176_s13 = smov [#allocation7]  }
  0x46   :  { %726 = vmatprep.subr.bf16.mxu0 %v969_v23  ;;  %680 = vmatpush1.bf16.msra.mxu1 %v1031_v39  ;;  %v1058_v23 = vld [vmem:[#allocation5 + $0x294] ss:$8 sps:$4 sm:$0xff]   ;;  %v1080_v32 = vld [vmem:[#allocation5 + $0x2d0] ss:$8 sps:$4 sm:$0xff]   ;;  %s809_s14 = sshll.u32 %s1176_s13, 4  ;;  %s810_s14 = int_to_ptr.vmem [resolvable:$true] %s809_s14 }
  0x47   :  { %681 = vmatprep.subr.bf16.mxu1 %v1035_v40  ;;  %v1094_v35 = vld [vmem:[#allocation5 + $0x2f4] ss:$8 sps:$4 sm:$0xff]   ;;  %v1092_v36 = vld [vmem:[#allocation5 + $0x2f0] ss:$8 sps:$4 sm:$0xff]   ;;  %p1147_p3 = scmp.lt.s32.totalorder %s810_s14, %s810_s14 }
  0x49   :  { %727 = vmatpush1.bf16.msra.mxu0 %v971_v24  ;;  %v1056_v24 = vld [vmem:[#allocation5 + $0x290] ss:$8 sps:$4 sm:$0xff]  }
  0x4a   :  { %728 = vmatprep.subr.bf16.mxu0 %v972_v26  ;;  %682 = vmatpush1.bf16.msra.mxu1 %v1037_v43  ;;  %v1062_v26 = vld [vmem:[#allocation5 + $0x2a0] ss:$8 sps:$4 sm:$0xff]  }
  0x4b   :  { %683 = vmatprep.subr.bf16.mxu1 %v1041_v44 }
  0x4d   :  { %729 = vmatpush1.bf16.msra.mxu0 %v974_v29  ;;  %v1076_v29 = vld [vmem:[#allocation5 + $0x2c4] ss:$8 sps:$4 sm:$0xff]  }
  0x4e   :  { %730 = vmatprep.subr.bf16.mxu0 %v975_v30  ;;  %684 = vmatpush1.bf16.msra.mxu1 %v1043_v47  ;;  %v1074_v30 = vld [vmem:[#allocation5 + $0x2c0] ss:$8 sps:$4 sm:$0xff]  }
  0x4f   :  { %685 = vmatprep.subr.bf16.mxu1 %v1047_v48 }
  0x51   :  { %731 = vmatpush1.bf16.msra.mxu0 %v977_v33  ;;  %v1088_v33 = vld [vmem:[#allocation5 + $0x2e4] ss:$8 sps:$4 sm:$0xff]  }
  0x52   :  { %732 = vmatprep.subr.bf16.mxu0 %v978_v34  ;;  %686 = vmatpush1.bf16.msra.mxu1 %v1049_v51  ;;  %v1086_v34 = vld [vmem:[#allocation5 + $0x2e0] ss:$8 sps:$4 sm:$0xff]  }
  0x53   :  { %687 = vmatprep.subr.bf16.mxu1 %v1053_v52 }
  0x55   :  { %733 = vmatpush1.bf16.msra.mxu0 %v980_v37  ;;  %v1095_v37 = vld [vmem:[#allocation2 + $0x10] ss:$24 sps:$4 sm:$0xff]  }
  0x56   :  { %734 = vmatprep.subr.bf16.mxu0 %v981_v38  ;;  %688 = vmatpush1.bf16.msra.mxu1 %v1055_v55 }
  0x57   :  { %689 = vmatprep.subr.bf16.mxu1 %v1059_v56 }
  0x59   :  { %735 = vmatpush1.bf16.msra.mxu0 %v983_v41 }
  0x5a   :  { %736 = vmatprep.subr.bf16.mxu0 %v984_v42  ;;  %690 = vmatpush1.bf16.msra.mxu1 %v1061_v60  ;;  %v147_v42 = vlaneseq }
  0x5b   :  { %691 = vmatprep.subr.bf16.mxu1 %v1065_v61 }
  0x5c   :  { %v148_v43 = vshrl.u32 %v147_v42, 7 }
  0x5d   :  { %737 = vmatpush1.bf16.msra.mxu0 %v986_v45  ;;  %v145_v45 = vld [vmem:[%s1240_s2] sm:$0x3]  ;;  %s1142_s2 = scalar_lea.vmem %s810_s14, 512 }
  0x5e   :  { %738 = vmatprep.subr.bf16.mxu0 %v987_v46  ;;  %692 = vmatpush1.bf16.msra.mxu1 %v1067_v0  ;;  %v149_v44 = vsub.s32 0, %v148_v43  ;;  %v153_v46 = vsub.s32 1, %v148_v43  ;;  %p1143_p2 = scmp.ne.s32.totalorder %s810_s14, %s1142_s2  ;;  %p1148_p4 = scmp.lt.s32.totalorder %s1142_s2, %s1142_s2 }
  0x5f   :  { %693 = vmatprep.subr.bf16.mxu1 %v1071_v3 }
  0x60   :  { %v150_v47 = vrot.slane %v145_v45, %v149_v44  ;;  %v154_v48 = vrot.slane %v145_v45, %v153_v46  ;;  %p1149_p5 = por %p1148_p4, %p1147_p3 }
  0x61   :  { %739 = vmatpush1.bf16.msra.mxu0 %v989_v49 }
  0x62   :  { %740 = vmatprep.subr.bf16.mxu0 %v993_v50  ;;  %694 = vmatpush1.bf16.msra.mxu1 %v1073_v5  ;;  %p1150_p6 = pnand %p1149_p5, %p1143_p2 }
  0x63   :  { %695 = vmatprep.subr.bf16.mxu1 %v1077_v7 }
  0x65   :  { %741 = vmatpush1.bf16.msra.mxu0 %v995_v53 }
  0x66   :  { %753 = vmatprep.subr.bf16.mxu0 %v1004_v54  ;;  %696 = vmatpush1.bf16.msra.mxu1 %v1079_v9 }
  0x67   :  { %697 = vmatprep.subr.bf16.mxu1 %v1083_v11 }
  0x68   :  { %743 = vmatmul.mubr.bf16.vlgmr.msra.gmra.mrb[0].mxu0 %v999_v57 }
  0x69   :  { %754 = vmatpush1.bf16.msra.mxu0 %v1002_v58  ;;  %785 = vmatprep.mubr.bf16.mxu0 %v1097_v1 }
  0x6a   :  { %755 = vmatprep.subr.bf16.mxu0 %v1010_v59  ;;  %698 = vmatpush1.bf16.msra.mxu1 %v1085_v13 }
  0x6d   :  { %756 = vmatpush1.bf16.msra.mxu0 %v1008_v63  ;;  %700 = vmatmul.mubr.bf16.vlgmr.msra.gmra.mrb[0].mxu1 %v1089_v15 }
  0x6e   :  { %757 = vmatprep.subr.bf16.mxu0 %v1016_v2 }
  0x71   :  { %758 = vmatpush1.bf16.msra.mxu0 %v1014_v4 }
  0x72   :  { %759 = vmatprep.subr.bf16.mxu0 %v1022_v6 }
  0x75   :  { %760 = vmatpush1.bf16.msra.mxu0 %v1020_v8 }
  0x76   :  { %761 = vmatprep.subr.bf16.mxu0 %v1028_v10 }
  0x79   :  { %762 = vmatpush1.bf16.msra.mxu0 %v1026_v12 }
  0x7a   :  { %763 = vmatprep.subr.bf16.mxu0 %v1034_v14 }
  0x7d   :  { %764 = vmatpush1.bf16.msra.mxu0 %v1032_v16 }
  0x7e   :  { %765 = vmatprep.subr.bf16.mxu0 %v1040_v17 }
  0x81   :  { %766 = vmatpush1.bf16.msra.mxu0 %v1038_v18 }
  0x82   :  { %767 = vmatprep.subr.bf16.mxu0 %v1046_v19 }
  0x85   :  { %768 = vmatpush1.bf16.msra.mxu0 %v1044_v20 }
  0x86   :  { %769 = vmatprep.subr.bf16.mxu0 %v1052_v21 }
  0x89   :  { %770 = vmatpush1.bf16.msra.mxu0 %v1050_v22 }
  0x8a   :  { %771 = vmatprep.subr.bf16.mxu0 %v1058_v23 }
  0x8d   :  { %772 = vmatpush1.bf16.msra.mxu0 %v1056_v24 }
  0x8e   :  { %773 = vmatprep.subr.bf16.mxu0 %v1064_v25 }
  0x91   :  { %774 = vmatpush1.bf16.msra.mxu0 %v1062_v26 }
  0x92   :  { %775 = vmatprep.subr.bf16.mxu0 %v1070_v27 }
  0x95   :  { %776 = vmatpush1.bf16.msra.mxu0 %v1068_v28 }
  0x96   :  { %777 = vmatprep.subr.bf16.mxu0 %v1076_v29 }
  0x99   :  { %778 = vmatpush1.bf16.msra.mxu0 %v1074_v30 }
  0x9a   :  { %779 = vmatprep.subr.bf16.mxu0 %v1082_v31 }
  0x9d   :  { %780 = vmatpush1.bf16.msra.mxu0 %v1080_v32 }
  0x9e   :  { %781 = vmatprep.subr.bf16.mxu0 %v1088_v33 }
  0xa1   :  { %782 = vmatpush1.bf16.msra.mxu0 %v1086_v34 }
  0xa2   :  { %783 = vmatprep.subr.bf16.mxu0 %v1094_v35 }
  0xa5   :  { %784 = vmatpush1.bf16.msra.mxu0 %v1092_v36 }
  0xa8   :  { %786 = vmatmul.mubr.bf16.vlgmr.msra.gmra.mrb[0].mxu0 %v1095_v37 }
 0x140   :  { %v701_v38 = vpop.f32.mrb[0].mxu1 }
 0x141   :  { %v703_v39 = vpop.f32.mrb[1].mxu1  ;;  %v702_v49 = vadd.f32 %v701_v38, %v150_v47 }
 0x142   :  { %v705_v40 = vpop.f32.mrb[2].mxu1  ;;  %v704_v50 = vadd.f32 %v703_v39, %v154_v48 }
 0x143   :  { %v707_v41 = vpop.f32.mrb[3].mxu1  ;;  %v706_v52 = vadd.f32 %v705_v40, %v150_v47 }
 0x144   :  { %v708_v55 = vadd.f32 %v707_v41, %v154_v48 }
 0x17b   :  { %v787_v51 = vpop.f32.mrb[0].mxu0 }
 0x17c   :  { %v925_v53 = vadd.f32 %v787_v51, %v702_v49  ;;  %v789_v54 = vpop.f32.mrb[1].mxu0 }
 0x17d   :  { %v927_v56 = vadd.f32 %v789_v54, %v704_v50  ;;  %v791_v57 = vpop.f32.mrb[2].mxu0 }
 0x17e   :  { %v796_v58 = vmax.f32 %v925_v53, 0.0  ;;  %v929_v59 = vadd.f32 %v791_v57, %v706_v52  ;;  %v793_v60 = vpop.f32.mrb[3].mxu0 }
 0x17f   :  { %v797_v61 = vmax.f32 %v927_v56, 0.0  ;;  %v931_v62 = vadd.f32 %v793_v60, %v708_v55 }
 0x180   :  { %800 = vst [vmem:[#allocation7] sm:$0xff] %v796_v58  ;;  %v798_v63 = vmax.f32 %v929_v59, 0.0 }
 0x181   :  { %801 = vst [vmem:[#allocation7 + $0x8] sm:$0xff] %v797_v61  ;;  %v799_v0 = vmax.f32 %v931_v62, 0.0 }
 0x182   :  { %802 = vst [vmem:[#allocation7 + $0x10] sm:$0xff] %v798_v63 }
 0x183   :  { %803 = vst [vmem:[#allocation7 + $0x18] sm:$0xff] %v799_v0 }
 0x184   :  { %1153 = shalt.err (!%p1150_p6)
}
 0x185   :  { %s1154_s17 = scalar_lea.hbm %s1241_s3, 512 }
 0x186   :  { %p1155_p7 = scmp.ne.s32.totalorder %s1241_s3, %s1154_s17  ;;  %p1158_p8 = scmp.lt.u32.totalorder %s1154_s17, %s1241_s3 }
 0x188   :  { %p1160_p9 = pnand %p1158_p8, %p1155_p7 }
 0x18a   :  { %1163 = shalt.err (!%p1160_p9)
}
 0x18b   :  { %s1177_s22 = smov 256   ;;  %s1178_s23 = smov 16  }
 0x18c   :  { %815 = dma.vmem_to_hbm [thread:$0]  %s810_s14, 512, %s1241_s3, [#allocation4], %s1177_s22, %s1177_s22, %s1178_s23  }
 0x18d   :  { %1168 = dma.done.wait [#allocation4], 512  }
 0x18e   :  { %1169 = vsyncadd [#allocation4], 4294966784 }
 0x18f   :  { %819 = vsyncpa [#allocation3], 1 }
 0x190   :  { %820 = vsyncpa [#allocation6], 1 }
 0x191   :  { %821 = vsyncpa [#allocation4], 1 }

</bundles_post_ra>
